<compile_context>
chip_gen: v5e
topology: v5e:2x2
jax: 0.10.0
libtpu: 0.0.40
codegen_flags: <defaults>
</compile_context>

<pallas_src>
import functools

import jax
import jax.numpy as jnp
from jax.experimental import pallas as pl
from jax.experimental.pallas import tpu as pltpu

LN_EPS = 1e-5  # PyTorch nn.LayerNorm default


def _ffwd_kernel(x_ref, g_ref, beta_ref, w1_ref, b1_ref, w2_ref, b2_ref,
                 o_ref, xln_ref, acc_ref):
    k = pl.program_id(1)

    # Once per row tile: LayerNorm in fp32, cache (compute_dtype) result; zero acc.
    @pl.when(k == 0)
    def _init():
        x = x_ref[...].astype(jnp.float32)
        mean = jnp.mean(x, axis=-1, keepdims=True)
        centered = x - mean
        var = jnp.mean(centered * centered, axis=-1, keepdims=True)
        x_hat = centered * jax.lax.rsqrt(var + LN_EPS)
        x_ln = x_hat * g_ref[...] + beta_ref[...]
        xln_ref[...] = x_ln.astype(xln_ref.dtype)
        acc_ref[...] = jnp.zeros_like(acc_ref)

    # Hidden chunk k: Linear1 (+bias, ReLU), then accumulate Linear2 into fp32 acc.
    h = jnp.dot(xln_ref[...], w1_ref[...],
                preferred_element_type=jnp.float32) + b1_ref[...]
    h = jnp.maximum(h, 0.0).astype(w2_ref.dtype)
    acc_ref[...] += jnp.dot(h, w2_ref[...], preferred_element_type=jnp.float32)

    # Last hidden chunk: add output bias and store (Dropout = identity, eval mode).
    @pl.when(k == pl.num_programs(1) - 1)
    def _finalize():
        o_ref[...] = (acc_ref[...] + b2_ref[...]).astype(o_ref.dtype)


def _round_up(x, m):
    return ((x + m - 1) // m) * m


def _pick_tk(hidden, tk_max):
    """Largest hidden-chunk size that divides `hidden` and is MXU/lane friendly."""
    if hidden <= tk_max:
        return hidden
    t = (min(tk_max, hidden) // 128) * 128
    while t >= 128:
        if hidden % t == 0:
            return t
        t -= 128
    return hidden  # fallback: keep full hidden resident


@functools.partial(jax.jit, static_argnames=("tm", "tk_max", "compute_dtype"))
def feedforward(x, gamma, beta, w1, b1, w2, b2, *, tm=256, tk_max=2048,
                compute_dtype=jnp.bfloat16):
    """x: (B, T, n_embd). w1: (n_embd, 4n), w2: (4n, n_embd) (already transposed)."""
    B, T, n_embd = x.shape
    hidden = w1.shape[1]
    M = B * T

    # Row tile: multiple of 8 sublanes, no larger than the padded row count.
    tm_eff = min(tm, _round_up(M, 8))
    tm_eff = max(8, (tm_eff // 8) * 8)
    M_pad = _round_up(M, tm_eff)

    tk = _pick_tk(hidden, tk_max)

    x2d = x.reshape(M, n_embd)
    if M_pad != M:
        x2d = jnp.pad(x2d, ((0, M_pad - M), (0, 0)))

    w1c = w1.astype(compute_dtype)
    w2c = w2.astype(compute_dtype)
    gamma2 = gamma.reshape(1, n_embd).astype(jnp.float32)
    beta2 = beta.reshape(1, n_embd).astype(jnp.float32)
    b1_2 = b1.reshape(1, hidden).astype(jnp.float32)
    b2_2 = b2.reshape(1, n_embd).astype(jnp.float32)

    grid = (M_pad // tm_eff, hidden // tk)

    # VMEM budget: double-buffered streamed blocks + scratch, 1.5x headroom,
    # clamped to also fit v7x's 64 MiB physical VMEM.
    isz = lambda dt: jnp.dtype(dt).itemsize
    est = (
        2 * tm_eff * n_embd * isz(x.dtype)            # x tile (double buffered)
        + 2 * tm_eff * n_embd * isz(x.dtype)          # out tile
        + 2 * n_embd * tk * isz(compute_dtype)        # W1 chunk
        + 2 * tk * n_embd * isz(compute_dtype)        # W2 chunk
        + 2 * (2 * n_embd + tk + n_embd) * 4          # gamma/beta/b1/b2
        + tm_eff * n_embd * isz(compute_dtype)        # cached x_ln scratch
        + tm_eff * n_embd * 4                         # fp32 accumulator
    )
    vmem_limit = int(min(max(int(est * 1.5), 32 * 1024 * 1024),
                         56 * 1024 * 1024))

    out2d = pl.pallas_call(
        _ffwd_kernel,
        out_shape=jax.ShapeDtypeStruct((M_pad, n_embd), x.dtype),
        grid_spec=pltpu.PrefetchScalarGridSpec(
            num_scalar_prefetch=0,
            grid=grid,
            in_specs=[
                pl.BlockSpec((tm_eff, n_embd), lambda i, k: (i, 0)),   # x rows
                pl.BlockSpec((1, n_embd), lambda i, k: (0, 0)),        # gamma
                pl.BlockSpec((1, n_embd), lambda i, k: (0, 0)),        # beta
                pl.BlockSpec((n_embd, tk), lambda i, k: (0, k)),       # W1 chunk
                pl.BlockSpec((1, tk), lambda i, k: (0, k)),            # b1 chunk
                pl.BlockSpec((tk, n_embd), lambda i, k: (k, 0)),       # W2 chunk
                pl.BlockSpec((1, n_embd), lambda i, k: (0, 0)),        # b2
            ],
            out_specs=pl.BlockSpec((tm_eff, n_embd), lambda i, k: (i, 0)),
            scratch_shapes=[
                pltpu.VMEM((tm_eff, n_embd), compute_dtype),  # cached LayerNorm output
                pltpu.VMEM((tm_eff, n_embd), jnp.float32),    # fp32 accumulator
            ],
        ),
        compiler_params=pltpu.CompilerParams(
            dimension_semantics=("parallel", "arbitrary"),
            vmem_limit_bytes=vmem_limit,
        ),
    )(x2d, gamma2, beta2, w1c, b1_2, w2c, b2_2)

    return out2d[:M].reshape(B, T, n_embd)


def init_params(key, n_embd):
    """Deterministic init mimicking PyTorch nn.Linear defaults (U(-1/sqrt(fan_in), +))."""
    hidden = 4 * n_embd
    k1, k2, k3, k4 = jax.random.split(key, 4)
    bound1 = 1.0 / (n_embd ** 0.5)
    bound2 = 1.0 / (hidden ** 0.5)
    # PyTorch weight is (out, in); store transposed (in, out) for x @ W.
    w1 = jax.random.uniform(k1, (n_embd, hidden), jnp.float32, -bound1, bound1)
    b1 = jax.random.uniform(k2, (hidden,), jnp.float32, -bound1, bound1)
    w2 = jax.random.uniform(k3, (hidden, n_embd), jnp.float32, -bound2, bound2)
    b2 = jax.random.uniform(k4, (n_embd,), jnp.float32, -bound2, bound2)
    gamma = jnp.ones((n_embd,), jnp.float32)   # LayerNorm weight init
    beta = jnp.zeros((n_embd,), jnp.float32)   # LayerNorm bias init
    return gamma, beta, w1, b1, w2, b2


def feedforward_ref(x, gamma, beta, w1, b1, w2, b2):
    """Pure-JAX fp32 reference for correctness checking."""
    mean = jnp.mean(x, axis=-1, keepdims=True)
    var = jnp.mean((x - mean) ** 2, axis=-1, keepdims=True)
    x_ln = (x - mean) * jax.lax.rsqrt(var + LN_EPS) * gamma + beta
    h = jnp.maximum(x_ln @ w1 + b1, 0.0)
    return h @ w2 + b2


if __name__ == "__main__":
    B, T, n_embd = 2, 8, 32  # hidden = 128
    key = jax.random.PRNGKey(0)
    kx, kp = jax.random.split(key)
    x = jax.random.normal(kx, (B, T, n_embd), jnp.float32)
    gamma, beta, w1, b1, w2, b2 = init_params(kp, n_embd)

    ref = feedforward_ref(x, gamma, beta, w1, b1, w2, b2)

    # fp32 matmul path: tight check of LayerNorm + fused two-matmul accumulation.
    out_f32 = jax.block_until_ready(
        feedforward(x, gamma, beta, w1, b1, w2, b2, compute_dtype=jnp.float32))
    assert out_f32.shape == (B, T, n_embd)
    assert jnp.allclose(out_f32, ref, atol=1e-4, rtol=1e-4), "fp32 path mismatch"

    # Default bf16 matmul path (fast MXU path on v6e/v7x): looser tolerance.
    out_bf16 = jax.block_until_ready(feedforward(x, gamma, beta, w1, b1, w2, b2))
    assert out_bf16.shape == (B, T, n_embd)
    assert jnp.allclose(out_bf16, ref, atol=3e-2, rtol=3e-2), "bf16 path mismatch"

    print("KERNEL_OK")
</pallas_src>

<mosaic_0001>
module attributes {stable_mosaic.version = 11 : i64} {
  func.func @_ffwd_kernel(%arg0: i32, %arg1: i32, %arg2: memref<16x32xf32, #tpu.memory_space<vmem>>, %arg3: memref<1x32xf32, #tpu.memory_space<vmem>>, %arg4: memref<1x32xf32, #tpu.memory_space<vmem>>, %arg5: memref<32x128xf32, #tpu.memory_space<vmem>>, %arg6: memref<1x128xf32, #tpu.memory_space<vmem>>, %arg7: memref<128x32xf32, #tpu.memory_space<vmem>>, %arg8: memref<1x32xf32, #tpu.memory_space<vmem>>, %arg9: memref<16x32xf32, #tpu.memory_space<vmem>>, %arg10: memref<16x32xf32, #tpu.memory_space<vmem>>, %arg11: memref<16x32xf32, #tpu.memory_space<vmem>>) attributes {dimension_semantics = [#tpu.dimension_semantics<parallel>, #tpu.dimension_semantics<arbitrary>], iteration_bounds = array<i64: 1, 1>, scalar_prefetch = 0 : i64, scratch_operands = 2 : i64, tpu.core_type = #tpu.core_type<tc>, window_params = [{transform_indices = @transform_0, window_bounds = array<i64: 16, 32>}, {pipeline_mode = #tpu.pipeline_mode<synchronous>, transform_indices = @transform_1, window_bounds = array<i64: 1, 32>}, {pipeline_mode = #tpu.pipeline_mode<synchronous>, transform_indices = @transform_2, window_bounds = array<i64: 1, 32>}, {transform_indices = @transform_3, window_bounds = array<i64: 32, 128>}, {transform_indices = @transform_4, window_bounds = array<i64: 1, 128>}, {transform_indices = @transform_5, window_bounds = array<i64: 128, 32>}, {pipeline_mode = #tpu.pipeline_mode<synchronous>, transform_indices = @transform_6, window_bounds = array<i64: 1, 32>}, {transform_indices = @transform_7, window_bounds = array<i64: 16, 32>}]} {
    %c0_i32 = arith.constant 0 : i32
    %0 = arith.cmpi eq, %arg1, %c0_i32 : i32
    %1 = arith.extui %0 : i1 to i32
    %c0_i32_0 = arith.constant 0 : i32
    %2 = arith.cmpi ne, %1, %c0_i32_0 : i32
    scf.if %2 {
      %c0_16 = arith.constant 0 : index
      %c0_17 = arith.constant 0 : index
      %19 = vector.load %arg2[%c0_16, %c0_17] : memref<16x32xf32, #tpu.memory_space<vmem>>, vector<16x32xf32>
      %cst_18 = arith.constant dense<0.000000e+00> : vector<16xf32>
      %20 = vector.multi_reduction <add>, %19, %cst_18 [1] : vector<16x32xf32> to vector<16xf32>
      %21 = vector.shape_cast %20 : vector<16xf32> to vector<16x1xf32>
      %cst_19 = arith.constant 3.200000e+01 : f32
      %22 = vector.broadcast %cst_19 : f32 to vector<16x1xf32>
      %23 = arith.divf %21, %22 : vector<16x1xf32>
      %24 = vector.broadcast %23 : vector<16x1xf32> to vector<16x32xf32>
      %25 = arith.subf %19, %24 : vector<16x32xf32>
      %26 = arith.mulf %25, %25 : vector<16x32xf32>
      %cst_20 = arith.constant dense<0.000000e+00> : vector<16xf32>
      %27 = vector.multi_reduction <add>, %26, %cst_20 [1] : vector<16x32xf32> to vector<16xf32>
      %28 = vector.shape_cast %27 : vector<16xf32> to vector<16x1xf32>
      %cst_21 = arith.constant 3.200000e+01 : f32
      %29 = vector.broadcast %cst_21 : f32 to vector<16x1xf32>
      %30 = arith.divf %28, %29 : vector<16x1xf32>
      %cst_22 = arith.constant 9.99999974E-6 : f32
      %31 = vector.broadcast %cst_22 : f32 to vector<16x1xf32>
      %32 = arith.addf %30, %31 : vector<16x1xf32>
      %33 = math.rsqrt %32 : vector<16x1xf32>
      %34 = vector.broadcast %33 : vector<16x1xf32> to vector<16x32xf32>
      %35 = arith.mulf %25, %34 : vector<16x32xf32>
      %c0_23 = arith.constant 0 : index
      %c0_24 = arith.constant 0 : index
      %36 = vector.load %arg3[%c0_23, %c0_24] : memref<1x32xf32, #tpu.memory_space<vmem>>, vector<1x32xf32>
      %37 = vector.broadcast %36 : vector<1x32xf32> to vector<16x32xf32>
      %38 = arith.mulf %35, %37 : vector<16x32xf32>
      %c0_25 = arith.constant 0 : index
      %c0_26 = arith.constant 0 : index
      %39 = vector.load %arg4[%c0_25, %c0_26] : memref<1x32xf32, #tpu.memory_space<vmem>>, vector<1x32xf32>
      %40 = vector.broadcast %39 : vector<1x32xf32> to vector<16x32xf32>
      %41 = arith.addf %38, %40 : vector<16x32xf32>
      %c0_27 = arith.constant 0 : index
      %c0_28 = arith.constant 0 : index
      %42 = vector.load %arg10[%c0_27, %c0_28] : memref<16x32xf32, #tpu.memory_space<vmem>>, vector<16x32xf32>
      tpu.vector_store %arg10[%c0_27, %c0_28], %41 {strides = array<i32>} : memref<16x32xf32, #tpu.memory_space<vmem>>, vector<16x32xf32>,
      %cst_29 = arith.constant 0.000000e+00 : f32
      %43 = vector.broadcast %cst_29 : f32 to vector<16x32xf32>
      %c0_30 = arith.constant 0 : index
      %c0_31 = arith.constant 0 : index
      %44 = vector.load %arg11[%c0_30, %c0_31] : memref<16x32xf32, #tpu.memory_space<vmem>>, vector<16x32xf32>
      tpu.vector_store %arg11[%c0_30, %c0_31], %43 {strides = array<i32>} : memref<16x32xf32, #tpu.memory_space<vmem>>, vector<16x32xf32>,
    } else {
    }
    %c0 = arith.constant 0 : index
    %c0_1 = arith.constant 0 : index
    %3 = vector.load %arg10[%c0, %c0_1] : memref<16x32xf32, #tpu.memory_space<vmem>>, vector<16x32xf32>
    %c0_2 = arith.constant 0 : index
    %c0_3 = arith.constant 0 : index
    %4 = vector.load %arg5[%c0_2, %c0_3] : memref<32x128xf32, #tpu.memory_space<vmem>>, vector<32x128xf32>
    %cst = arith.constant dense<0.000000e+00> : vector<16x128xf32>
    %5 = tpu.matmul %3, %4, %cst {dimension_numbers = #tpu.dot_dimension_numbers<[1], [0], [0], [1], [0, 0, 1, 1], [], []>} : vector<16x32xf32>, vector<32x128xf32>, vector<16x128xf32> -> vector<16x128xf32>
    %c0_4 = arith.constant 0 : index
    %c0_5 = arith.constant 0 : index
    %6 = vector.load %arg6[%c0_4, %c0_5] : memref<1x128xf32, #tpu.memory_space<vmem>>, vector<1x128xf32>
    %7 = vector.broadcast %6 : vector<1x128xf32> to vector<16x128xf32>
    %8 = arith.addf %5, %7 : vector<16x128xf32>
    %cst_6 = arith.constant 0.000000e+00 : f32
    %9 = vector.broadcast %cst_6 : f32 to vector<16x128xf32>
    %10 = arith.maximumf %8, %9 : vector<16x128xf32>
    %c0_7 = arith.constant 0 : index
    %c0_8 = arith.constant 0 : index
    %11 = vector.load %arg11[%c0_7, %c0_8] : memref<16x32xf32, #tpu.memory_space<vmem>>, vector<16x32xf32>
    %c0_9 = arith.constant 0 : index
    %c0_10 = arith.constant 0 : index
    %12 = vector.load %arg7[%c0_9, %c0_10] : memref<128x32xf32, #tpu.memory_space<vmem>>, vector<128x32xf32>
    %cst_11 = arith.constant dense<0.000000e+00> : vector<16x32xf32>
    %13 = tpu.matmul %10, %12, %cst_11 {dimension_numbers = #tpu.dot_dimension_numbers<[1], [0], [0], [1], [0, 0, 1, 1], [], []>} : vector<16x128xf32>, vector<128x32xf32>, vector<16x32xf32> -> vector<16x32xf32>
    %14 = arith.addf %11, %13 : vector<16x32xf32>
    %c0_12 = arith.constant 0 : index
    %c0_13 = arith.constant 0 : index
    %15 = vector.load %arg11[%c0_12, %c0_13] : memref<16x32xf32, #tpu.memory_space<vmem>>, vector<16x32xf32>
    tpu.vector_store %arg11[%c0_12, %c0_13], %14 {strides = array<i32>} : memref<16x32xf32, #tpu.memory_space<vmem>>, vector<16x32xf32>,
    %c0_i32_14 = arith.constant 0 : i32
    %16 = arith.cmpi eq, %arg1, %c0_i32_14 : i32
    %17 = arith.extui %16 : i1 to i32
    %c0_i32_15 = arith.constant 0 : i32
    %18 = arith.cmpi ne, %17, %c0_i32_15 : i32
    scf.if %18 {
      %c0_16 = arith.constant 0 : index
      %c0_17 = arith.constant 0 : index
      %19 = vector.load %arg11[%c0_16, %c0_17] : memref<16x32xf32, #tpu.memory_space<vmem>>, vector<16x32xf32>
      %c0_18 = arith.constant 0 : index
      %c0_19 = arith.constant 0 : index
      %20 = vector.load %arg8[%c0_18, %c0_19] : memref<1x32xf32, #tpu.memory_space<vmem>>, vector<1x32xf32>
      %21 = vector.broadcast %20 : vector<1x32xf32> to vector<16x32xf32>
      %22 = arith.addf %19, %21 : vector<16x32xf32>
      %c0_20 = arith.constant 0 : index
      %c0_21 = arith.constant 0 : index
      %23 = vector.load %arg9[%c0_20, %c0_21] : memref<16x32xf32, #tpu.memory_space<vmem>>, vector<16x32xf32>
      tpu.vector_store %arg9[%c0_20, %c0_21], %22 {strides = array<i32>} : memref<16x32xf32, #tpu.memory_space<vmem>>, vector<16x32xf32>,
    } else {
    }
    return
  }
  func.func @transform_0(%arg0: i32, %arg1: i32) -> (i32, i32) {
    %c0_i32 = arith.constant 0 : i32
    %c0_i32_0 = arith.constant 0 : i32
    return %arg0, %c0_i32 : i32, i32
  }
  func.func @transform_1(%arg0: i32, %arg1: i32) -> (i32, i32) {
    %c0_i32 = arith.constant 0 : i32
    %c0_i32_0 = arith.constant 0 : i32
    %c0_i32_1 = arith.constant 0 : i32
    return %c0_i32, %c0_i32_0 : i32, i32
  }
  func.func @transform_2(%arg0: i32, %arg1: i32) -> (i32, i32) {
    %c0_i32 = arith.constant 0 : i32
    %c0_i32_0 = arith.constant 0 : i32
    %c0_i32_1 = arith.constant 0 : i32
    return %c0_i32, %c0_i32_0 : i32, i32
  }
  func.func @transform_3(%arg0: i32, %arg1: i32) -> (i32, i32) {
    %c0_i32 = arith.constant 0 : i32
    %c0_i32_0 = arith.constant 0 : i32
    return %c0_i32, %arg1 : i32, i32
  }
  func.func @transform_4(%arg0: i32, %arg1: i32) -> (i32, i32) {
    %c0_i32 = arith.constant 0 : i32
    %c0_i32_0 = arith.constant 0 : i32
    return %c0_i32, %arg1 : i32, i32
  }
  func.func @transform_5(%arg0: i32, %arg1: i32) -> (i32, i32) {
    %c0_i32 = arith.constant 0 : i32
    %c0_i32_0 = arith.constant 0 : i32
    return %arg1, %c0_i32 : i32, i32
  }
  func.func @transform_6(%arg0: i32, %arg1: i32) -> (i32, i32) {
    %c0_i32 = arith.constant 0 : i32
    %c0_i32_0 = arith.constant 0 : i32
    %c0_i32_1 = arith.constant 0 : i32
    return %c0_i32, %c0_i32_0 : i32, i32
  }
  func.func @transform_7(%arg0: i32, %arg1: i32) -> (i32, i32) {
    %c0_i32 = arith.constant 0 : i32
    %c0_i32_0 = arith.constant 0 : i32
    return %arg0, %c0_i32 : i32, i32
  }
}

</mosaic_0001>

<bundles_post_ra>
// kernel: feedforward.1
= control target key start
LH: loop header
LB: loop body
LE: loop exit
PB: predicated region body
PF: predicated region fallthrough
CT: control target
= control target key end

     0   :  { %vm33_vm0 = vcmask 261120   ;;  %s423_s0 = inlined_call_operand.vmem [shape: f32[16,32], index: 0, kind: input, shape index: {}]   ;;  %s424_s1 = inlined_call_operand.vmem [shape: f32[1,32], index: 1, kind: input, shape index: {}]   ;;  %s425_s2 = inlined_call_operand.vmem [shape: f32[1,32], index: 2, kind: input, shape index: {}]   ;;  %s426_s3 = inlined_call_operand.vmem [shape: f32[32,128], index: 3, kind: input, shape index: {}]   ;;  %s427_s4 = inlined_call_operand.vmem [shape: f32[1,128], index: 4, kind: input, shape index: {}]   ;;  %s428_s5 = inlined_call_operand.vmem [shape: f32[128,32], index: 5, kind: input, shape index: {}]   ;;  %s429_s6 = inlined_call_operand.vmem [shape: f32[1,32], index: 6, kind: input, shape index: {}]   ;;  %s430_s7 = inlined_call_operand.hbm [shape: f32[16,32], index: 7, kind: output, shape index: {}]  }
   0x1   :  { %v31_v0 = vld [vmem:[%s423_s0] sm:$0xff] }
   0x2   :  { %v34_v1 = vsel %vm33_vm0, %v31_v0, 0.0 }
   0x3   :  { %35 = vadd.xlane.f32.xlu0 %v34_v1 }
   0x4   :  { %12 = vsyncpa [#allocation5], 0  ;;  %v32_v2 = vld [vmem:[%s423_s0 + $0x8] sm:$0xff]  ;;  %v278_v4 = vmov 32.0   ;;  %v106_v21 = vld [vmem:[%s426_s3 + $0x18] sm:$0xff]  ;;  %s207_s26 = sshll.u32 %s430_s7, 4  ;;  %s208_s26 = int_to_ptr.hbm [resolvable:$true] %s207_s26 }
   0x5   :  { %v37_v3 = vsel %vm33_vm0, %v32_v2, 0.0  ;;  %246 = vrcp.f32 %v278_v4  ;;  %130 = vmatpush.msra.mxu0 %v106_v21  ;;  %v105_v22 = vld [vmem:[%s426_s3 + $0x10] sm:$0xff]  ;;  %v104_v25 = vld [vmem:[%s426_s3 + $0x8] sm:$0xff]  ;;  %v103_v27 = vld [vmem:[%s426_s3] sm:$0xff]  ;;  %s282_s27 = smov 8  }
   0x6   :  { %v160_v33 = vld [vmem:[%s428_s5 + $0x78] sm:$0xff]  ;;  %v159_v34 = vld [vmem:[%s428_s5 + $0x70] sm:$0xff]  ;;  %v158_v36 = vld [vmem:[%s428_s5 + $0x68] sm:$0xff] }
   0x7   :  { %131 = vmatpush.msra.mxu0 %v105_v22  ;;  %161 = vmatpush.msra.mxu1 %v160_v33  ;;  %v157_v38 = vld [vmem:[%s428_s5 + $0x60] sm:$0xff]  ;;  %v156_v41 = vld [vmem:[%s428_s5 + $0x58] sm:$0xff]  ;;  %v155_v45 = vld [vmem:[%s428_s5 + $0x50] sm:$0xff] }
   0x8   :  { %221 = vmatpush.msra.mxu2 %v160_v33  ;;  %v242_v44 = vld [vmem:[%s424_s1] ss:$0 sm:$0xff]  ;;  %v154_v50 = vld [vmem:[%s428_s5 + $0x48] sm:$0xff]  ;;  %v152_v56 = vld [vmem:[%s428_s5 + $0x38] sm:$0xff] }
   0x9   :  { %132 = vmatpush.msra.mxu0 %v104_v25  ;;  %162 = vmatpush.msra.mxu1 %v159_v34  ;;  %v243_v48 = vld [vmem:[%s425_s2] ss:$0 sm:$0xff]  ;;  %v151_v58 = vld [vmem:[%s428_s5 + $0x30] sm:$0xff]  ;;  %v150_v61 = vld [vmem:[%s428_s5 + $0x28] sm:$0xff] }
   0xa   :  { %222 = vmatpush.msra.mxu2 %v159_v34  ;;  %v153_v53 = vld [vmem:[%s428_s5 + $0x40] sm:$0xff]  ;;  %v148_v1 = vld [vmem:[%s428_s5 + $0x18] sm:$0xff]  ;;  %v147_v4 = vld [vmem:[%s428_s5 + $0x10] sm:$0xff] }
   0xb   :  { %38 = vadd.xlane.f32.xlu0 %v37_v3  ;;  %v247_v5 = vpop.eup %246  ;;  %133 = vmatpush.msra.mxu0 %v103_v27  ;;  %v149_v63 = vld [vmem:[%s428_s5 + $0x20] sm:$0xff] }
   0xc   :  { %v41_v6 = vmul.f32 32.0, %v247_v5  ;;  %vm45_vm1 = vweird.f32 %v247_v5  ;;  %163 = vmatpush.msra.mxu1 %v158_v36  ;;  %223 = vmatpush.msra.mxu2 %v158_v36 }
   0xe   :  { %v42_v7 = vsub.f32 1.0, %v41_v6  ;;  %164 = vmatpush.msra.mxu1 %v157_v38  ;;  %224 = vmatpush.msra.mxu2 %v157_v38  ;;  %v145_v6 = vld [vmem:[%s428_s5] sm:$0xff] }
  0x10   :  { %v43_v8 = vmul.f32 %v247_v5, %v42_v7  ;;  %165 = vmatpush.msra.mxu1 %v156_v41  ;;  %225 = vmatpush.msra.mxu2 %v156_v41  ;;  %v279_v7 = vmov 0.0  }
  0x11   :  { %99 = vst.msk [vmem:[#allocation3] sm:$0xff] %vm33_vm0, %v279_v7 }
  0x12   :  { %v44_v9 = vadd.f32 %v247_v5, %v43_v8  ;;  %166 = vmatpush.msra.mxu1 %v155_v45  ;;  %226 = vmatpush.msra.mxu2 %v155_v45  ;;  %100 = vst.msk [vmem:[#allocation3 + $0x8] sm:$0xff] %vm33_vm0, %v279_v7  ;;  %v244_v8 = vld [vmem:[%s427_s4] ss:$0 sm:$0xff]  ;;  %s280_s4 = smov [#allocation4]  }
  0x13   :  { %s205_s23 = sshll.u32 %s280_s4, 4  ;;  %s206_s23 = int_to_ptr.vmem [resolvable:$true] %s205_s23 }
  0x14   :  { %v46_v10 = vsel %vm45_vm1, %v247_v5, %v44_v9  ;;  %167 = vmatpush.msra.mxu1 %v154_v50  ;;  %227 = vmatpush.msra.mxu2 %v154_v50  ;;  %v146_v5 = vld [vmem:[%s428_s5 + $0x8] sm:$0xff] }
  0x16   :  { %168 = vmatpush.msra.mxu1 %v153_v53  ;;  %228 = vmatpush.msra.mxu2 %v153_v53 }
  0x18   :  { %169 = vmatpush.msra.mxu1 %v152_v56  ;;  %229 = vmatpush.msra.mxu2 %v152_v56 }
  0x19   :  { %v144_v21 = vld [vmem:[#allocation3 + $0x8] sm:$0xff] }
  0x1a   :  { %170 = vmatpush.msra.mxu1 %v151_v58  ;;  %230 = vmatpush.msra.mxu2 %v151_v58 }
  0x1c   :  { %171 = vmatpush.msra.mxu1 %v150_v61  ;;  %231 = vmatpush.msra.mxu2 %v150_v61 }
  0x1e   :  { %172 = vmatpush.msra.mxu1 %v149_v63  ;;  %232 = vmatpush.msra.mxu2 %v149_v63 }
  0x20   :  { %173 = vmatpush.msra.mxu1 %v148_v1  ;;  %233 = vmatpush.msra.mxu2 %v148_v1 }
  0x22   :  { %174 = vmatpush.msra.mxu1 %v147_v4  ;;  %234 = vmatpush.msra.mxu2 %v147_v4 }
  0x24   :  { %175 = vmatpush.msra.mxu1 %v146_v5  ;;  %235 = vmatpush.msra.mxu2 %v146_v5 }
  0x26   :  { %176 = vmatpush.msra.mxu1 %v145_v6  ;;  %236 = vmatpush.msra.mxu2 %v145_v6 }
  0x76   :  { %v36_v11 = vpop.xlane.xlu0 %35 }
  0x77   :  { %v47_v12 = vmul.f32 %v46_v10, %v36_v11 }
  0x79   :  { %v49_v13 = vsub.f32 %v31_v0, %v47_v12 }
  0x7b   :  { %v51_v14 = vmul.f32 %v49_v13, %v49_v13 }
  0x7d   :  { %v53_v15 = vsel %vm33_vm0, %v51_v14, 0.0 }
  0x7e   :  { %54 = vadd.xlane.f32.xlu1 %v53_v15  ;;  %v39_v16 = vpop.xlane.xlu0 %38  ;;  %v143_v15 = vld [vmem:[#allocation3] sm:$0xff] }
  0x7f   :  { %v48_v17 = vmul.f32 %v46_v10, %v39_v16 }
  0x81   :  { %v332_v18 = vsub.f32 %v32_v2, %v48_v17 }
  0x83   :  { %v52_v19 = vmul.f32 %v332_v18, %v332_v18 }
  0x85   :  { %v56_v20 = vsel %vm33_vm0, %v52_v19, 0.0 }
  0x86   :  { %57 = vadd.xlane.f32.xlu1 %v56_v20 }
  0xf1   :  { %v55_v23 = vpop.xlane.xlu1 %54 }
  0xf2   :  { %v59_v24 = vmul.f32 %v55_v23, %v46_v10 }
  0xf4   :  { %v61_v26 = vadd.f32 1e-05, %v59_v24 }
  0xf6   :  { %248 = vrsqrt.f32 %v61_v26  ;;  %vm69_vm3 = vweird.f32 %v61_v26 }
  0xf9   :  { %v58_v28 = vpop.xlane.xlu1 %57 }
  0xfa   :  { %v60_v29 = vmul.f32 %v58_v28, %v46_v10 }
  0xfc   :  { %v249_v30 = vpop.eup %248  ;;  %v62_v31 = vadd.f32 1e-05, %v60_v29 }
  0xfd   :  { %v64_v32 = vmul.f32 %v249_v30, %v61_v26  ;;  %vm70_vm2 = vweird.f32 %v249_v30 }
  0xfe   :  { %250 = vrsqrt.f32 %v62_v31  ;;  %vm71_vm4 = vmor %vm69_vm3, %vm70_vm2  ;;  %vm79_vm6 = vweird.f32 %v62_v31 }
  0xff   :  { %v65_v35 = vmul.f32 %v249_v30, %v64_v32 }
 0x101   :  { %v66_v37 = vmul.f32 0.5, %v65_v35 }
 0x103   :  { %v67_v39 = vsub.f32 1.5, %v66_v37 }
 0x104   :  { %v251_v40 = vpop.eup %250 }
 0x105   :  { %v68_v42 = vmul.f32 %v249_v30, %v67_v39  ;;  %v74_v43 = vmul.f32 %v251_v40, %v62_v31  ;;  %vm80_vm5 = vweird.f32 %v251_v40 }
 0x106   :  { %vm81_vm7 = vmor %vm79_vm6, %vm80_vm5 }
 0x107   :  { %v72_v46 = vsel %vm71_vm4, %v249_v30, %v68_v42  ;;  %v75_v47 = vmul.f32 %v251_v40, %v74_v43 }
 0x108   :  { %v83_v49 = vmul.f32 %v72_v46, %v49_v13 }
 0x109   :  { %v76_v51 = vmul.f32 0.5, %v75_v47 }
 0x10a   :  { %v89_v52 = vmul.f32 %v242_v44, %v83_v49 }
 0x10b   :  { %v77_v54 = vsub.f32 1.5, %v76_v51 }
 0x10c   :  { %v95_v55 = vadd.f32 %v243_v48, %v89_v52 }
 0x10d   :  { %v78_v57 = vmul.f32 %v251_v40, %v77_v54 }
 0x10e   :  { %97 = vst.msk [vmem:[#allocation2] sm:$0xff] %vm33_vm0, %v95_v55 }
 0x10f   :  { %v82_v59 = vsel %vm81_vm7, %v251_v40, %v78_v57 }
 0x110   :  { %v84_v60 = vmul.f32 %v82_v59, %v332_v18  ;;  %v245_v18 = vld [vmem:[%s429_s6] ss:$0 sm:$0xff]  ;;  %s281_s6 = smov 128  }
 0x112   :  { %v90_v62 = vmul.f32 %v242_v44, %v84_v60 }
 0x114   :  { %v96_v0 = vadd.f32 %v243_v48, %v90_v62 }
 0x115   :  { %v101_v2 = vld [vmem:[#allocation2] sm:$0xff] }
 0x116   :  { %98 = vst.msk [vmem:[#allocation2 + $0x8] sm:$0xff] %vm33_vm0, %v96_v0  ;;  %219 = vmatmul.msk.f32.vlgmr.msra.gmra.mxu0 %vm33_vm0, %v101_v2 }
 0x11d   :  { %v102_v3 = vld [vmem:[#allocation2 + $0x8] sm:$0xff] }
 0x11e   :  { %220 = vmatmul.msk.f32.gmra.mxu0 %vm33_vm0, %v102_v3 }
 0x193   :  { %v135_v9 = vpop.f32.mrf.mxu0 }
 0x194   :  { %v136_v10 = vadd.f32 %v244_v8, %v135_v9 }
 0x196   :  { %v141_v11 = vmax.f32 %v136_v10, 0.0 }
 0x198   :  { %177 = vmatmul.f32.vlgmr.msra.gmra.mxu1 %v141_v11 }
 0x19b   :  { %v138_v12 = vpop.f32.mrf.mxu0 }
 0x19c   :  { %v139_v13 = vadd.f32 %v244_v8, %v138_v12 }
 0x19e   :  { %v142_v14 = vmax.f32 %v139_v13, 0.0 }
 0x1a0   :  { %180 = vmatmul.f32.vlgmr.msra.gmra.mxu2 %v142_v14 }
 0x215   :  { %v178_v16 = vpop.f32.mrf.mxu1 }
 0x216   :  { %v184_v17 = vadd.f32 %v178_v16, %v143_v15 }
 0x218   :  { %186 = vst.msk [vmem:[#allocation3] sm:$0xff] %vm33_vm0, %v184_v17 }
 0x21f   :  { %v191_v19 = vld [vmem:[#allocation3] sm:$0xff] }
 0x220   :  { %v197_v20 = vadd.f32 %v245_v18, %v191_v19 }
 0x222   :  { %199 = vst.msk [vmem:[#allocation4] sm:$0xff] %vm33_vm0, %v197_v20 }
 0x223   :  { %v181_v22 = vpop.f32.mrf.mxu2 }
 0x224   :  { %v185_v23 = vadd.f32 %v181_v22, %v144_v21 }
 0x226   :  { %187 = vst.msk [vmem:[#allocation3 + $0x8] sm:$0xff] %vm33_vm0, %v185_v23 }
 0x22d   :  { %v192_v24 = vld [vmem:[#allocation3 + $0x8] sm:$0xff] }
 0x22e   :  { %v198_v25 = vadd.f32 %v245_v18, %v192_v24 }
 0x230   :  { %200 = vst.msk [vmem:[#allocation4 + $0x8] sm:$0xff] %vm33_vm0, %v198_v25 }
 0x231   :  { %213 = dma.vmem_to_hbm [thread:$0]  %s206_s23, 256, %s208_s26, [#allocation5], %s281_s6, %s281_s6, %s282_s27  }
 0x232   :  { %276 = dma.done.wait [#allocation5], 256  }
 0x233   :  { %277 = vsyncadd [#allocation5], 4294967040 }
 0x234   :  { %218 = vsyncpa [#allocation5], 1 }

</bundles_post_ra>
